<compile_context>
chip_gen: v7x
topology: tpu7x:2x2x1
jax: 0.10.0
libtpu: 0.0.40
codegen_flags: <defaults>
</compile_context>

<pallas_src>
import numpy as np
import jax
import jax.numpy as jnp
from jax import lax
from jax.experimental import pallas as pl
from jax.experimental.pallas import tpu as pltpu

EPS = 1e-5
POOL_SIZES = (1, 2, 3)                       # SPP pool sizes of AttentionModule
NUM_BINS = sum(s * s for s in POOL_SIZES)    # 14
HIGH = lax.Precision.HIGHEST                 # only used by the pure-JAX reference
BIG = 1e30                                   # additive mask magnitude for max-pool


# ----------------------------------------------------------------------------
# static tables (parameter / index setup -- plain Python glue)
# ----------------------------------------------------------------------------
def _bins(length, s):
    # PyTorch adaptive pooling bin boundaries: [floor(i*L/s), ceil((i+1)*L/s))
    return [((i * length) // s, ((i + 1) * length + s - 1) // s) for i in range(s)]


def build_pool_tables(H, W):
    """PavgT: (F, HW) averaging weights; maskFHW: (F, HW) bin membership."""
    HW = H * W
    PavgT = np.zeros((NUM_BINS, HW), np.float32)
    maskFHW = np.zeros((NUM_BINS, HW), np.float32)
    f = 0
    for s in POOL_SIZES:
        for (r0, r1) in _bins(H, s):
            for (c0, c1) in _bins(W, s):
                area = (r1 - r0) * (c1 - c0)
                assert area > 0, "empty adaptive-pool bin (max-pool mask unsafe)"
                for y in range(r0, r1):
                    for x in range(c0, c1):
                        q = y * W + x
                        PavgT[f, q] = 1.0 / area
                        maskFHW[f, q] = 1.0
                f += 1
    return PavgT, maskFHW


def build_spatial_toeplitz(w_sp, H, W):
    """7x7 'same' conv (2ch -> 1ch, no bias) as two (HW, HW) dense matrices
    acting on the channel-max map and the channel-mean map (column vectors)."""
    k = w_sp.shape[-1]
    pad = (k - 1) // 2
    HW = H * W
    M = np.zeros((2, HW, HW), np.float32)
    w = np.asarray(w_sp)  # (1, 2, k, k)
    for c in range(2):
        for dy in range(k):
            for dx in range(k):
                for y in range(H):
                    for x in range(W):
                        yy, xx = y + dy - pad, x + dx - pad
                        if 0 <= yy < H and 0 <= xx < W:
                            M[c, y * W + x, yy * W + xx] += w[0, c, dy, dx]
    return M[0], M[1]


def _full_spec(shape):
    return pl.BlockSpec(shape, lambda *_: (0,) * len(shape))


try:
    _VMEM_CAP = int(pltpu.get_tpu_info().vmem_capacity_bytes)
except Exception:                                   # pragma: no cover
    _VMEM_CAP = 64 * 1024 * 1024                    # v7x-safe fallback


def _vmem_limit(nbytes):
    """Budget scoped VMEM: operands + margin, capped to 0.8x physical (v7x headroom)."""
    return int(min(int(0.8 * _VMEM_CAP), max(int(nbytes) + (8 << 20), 32 << 20)))


def _pick_k_tile(K, cols, itemsize, target_bytes):
    """Largest K-tile that divides K, is a multiple of 128, keeps the streamed
    (TK, cols) weight tile under target_bytes, and leaves >= 2 K steps."""
    best = None
    d = 128
    while d < K:
        if K % d == 0 and d * cols * itemsize <= target_bytes:
            best = d
        d += 128
    return best if best is not None else K


def _bn_fold(g, b, rm, rv):
    s = g / jnp.sqrt(rv + EPS)
    return s, b - rm * s


# ----------------------------------------------------------------------------
# Kernel 1: SPP pooling + spatial branch, one batch element per grid step
# ----------------------------------------------------------------------------
def pool_kernel(x_ref, pavgT_ref, maskadd_ref, mspmax_ref, mspmean_ref,
                spbn_s_ref, spbn_b_ref,
                pooled_ref, sp_ref, pool_scr):
    x = x_ref[0]                                   # (HW, C) f32
    x16 = x.astype(jnp.bfloat16)
    F = pavgT_ref.shape[0]

    # --- SPP avg bins: one small matmul (bf16 operands, f32 accumulate) ---
    avg = jnp.dot(pavgT_ref[...], x16, preferred_element_type=jnp.float32)  # (F, C)

    # --- SPP max bins ---
    # bin 0 (pool size 1) is the global max: direct sublane reduce, no mask pass
    pool_scr[0:1, :] = avg[0:1, :] + jnp.max(x, axis=0, keepdims=True)
    # bins 1..13 (sizes 2 and 3): additive mask (0 in-bin, -BIG out-of-bin),
    # pre-broadcast over channels -> plain VPU add + sublane reduce per bin.
    for f in range(1, F):                                       # unrolled, 13 passes
        mx = jnp.max(x + maskadd_ref[f - 1], axis=0, keepdims=True)   # (1, C)
        pool_scr[f:f + 1, :] = avg[f:f + 1, :] + mx
    pooled_ref[0] = pool_scr[...]                               # (F, C)

    # --- spatial branch: channel max/mean, 7x7 conv (Toeplitz), BN, sigmoid ---
    max_map = jnp.max(x, axis=1, keepdims=True).astype(jnp.bfloat16)    # (HW, 1)
    mean_map = jnp.mean(x, axis=1, keepdims=True).astype(jnp.bfloat16)  # (HW, 1)
    sp = (jnp.dot(mspmax_ref[...], max_map, preferred_element_type=jnp.float32)
          + jnp.dot(mspmean_ref[...], mean_map, preferred_element_type=jnp.float32))
    sp = sp * spbn_s_ref[...] + spbn_b_ref[...]                 # BatchNorm2d(1) (eval)
    sp_ref[0] = jax.nn.sigmoid(sp)                              # (HW, 1)


# ----------------------------------------------------------------------------
# Kernel 2: batched channel MLP (two 1x1 convs + BN + sigmoid), K-tiled over FC
# ----------------------------------------------------------------------------
def channel_mlp_kernel(p_ref, w1_ref, w2t_ref, s_ref, b_ref, out_ref, acc_ref):
    k = pl.program_id(0)

    @pl.when(k == 0)
    def _init():
        acc_ref[...] = jnp.zeros_like(acc_ref)

    acc_ref[...] += jnp.dot(p_ref[...].astype(jnp.bfloat16), w1_ref[...],
                            preferred_element_type=jnp.float32)          # (N, R)

    @pl.when(k == pl.num_programs(0) - 1)
    def _finalize():
        hidden = jnp.maximum(acc_ref[...], 0.0).astype(jnp.bfloat16)     # ReLU
        pre = jnp.dot(hidden, w2t_ref[...],
                      preferred_element_type=jnp.float32)                # (N, C)
        out_ref[...] = jax.nn.sigmoid(pre * s_ref[...] + b_ref[...])     # BN + sigmoid


# ----------------------------------------------------------------------------
# Kernel 3: apply the attention scales (elementwise, channel-blocked)
# ----------------------------------------------------------------------------
def apply_kernel(x_ref, ch_ref, sp_ref, xid_ref, xage_ref):
    x = x_ref[0]                                    # (HW, CB)
    scale = (ch_ref[0] + sp_ref[0]) * 0.5           # (1,CB) + (HW,1) -> (HW,CB)
    x_age = x * scale
    xage_ref[0] = x_age
    xid_ref[0] = x - x_age


# ----------------------------------------------------------------------------
# Kernel 4: output_layer as a K-tiled matmul (BN2d/Dropout/BN1d folded away)
# ----------------------------------------------------------------------------
def embed_kernel(x_ref, w_ref, b_ref, out_ref, acc_ref):
    k = pl.program_id(1)

    @pl.when(k == 0)
    def _init():
        acc_ref[...] = jnp.zeros_like(acc_ref)

    acc_ref[...] += jnp.dot(x_ref[...].astype(jnp.bfloat16), w_ref[...],
                            preferred_element_type=jnp.float32)

    @pl.when(k == pl.num_programs(1) - 1)
    def _finalize():
        out_ref[...] = (acc_ref[...] + b_ref[...]).astype(out_ref.dtype)


# ----------------------------------------------------------------------------
# wrapper
# ----------------------------------------------------------------------------
def densenet_aifr_pallas(feat_nchw, params):
    """Runs AttentionModule + output_layer on the backbone feature map."""
    N, C, H, W = feat_nchw.shape
    HW = H * W
    F = NUM_BINS
    FC = F * C
    R = int(params['w1'].shape[0])
    E = int(params['w_lin'].shape[0])
    K = HW * C

    # layout glue: NCHW -> (N, HW, C)
    x_hwc = jnp.transpose(feat_nchw, (0, 2, 3, 1)).reshape(N, HW, C).astype(jnp.float32)

    PavgT, maskFHW = build_pool_tables(H, W)
    # pre-broadcast bf16 additive mask for bins 1..F-1 (bin 0 is a direct reduce)
    mask_add = np.broadcast_to(((maskFHW[1:, :, None] - 1.0) * BIG),
                               (F - 1, HW, C)).astype(np.float32)
    msp_max, msp_mean = build_spatial_toeplitz(np.asarray(params['w_sp']), H, W)

    spbn_s, spbn_b = _bn_fold(params['bn_sp_g'], params['bn_sp_b'],
                              params['bn_sp_rm'], params['bn_sp_rv'])

    # -------------------- stage 1: pooling + spatial scale --------------------
    pool_weight_bytes = F * HW * 2 + (F - 1) * HW * C * 2 + 2 * HW * HW * 2 + 8
    pool_io = HW * C * 4 + F * C * 4 + HW * 4
    pool_vmem = 2 * (pool_weight_bytes + pool_io) + F * C * 4

    out_block_pool = pl.BlockSpec((1, F, C), lambda n: (n, 0, 0))
    out_block_sp = pl.BlockSpec((1, HW, 1), lambda n: (n, 0, 0))
    pooled, sp_scale = pl.pallas_call(
        pool_kernel,
        out_shape=(jax.ShapeDtypeStruct((N, F, C), jnp.float32),
                   jax.ShapeDtypeStruct((N, HW, 1), jnp.float32)),
        grid_spec=pltpu.PrefetchScalarGridSpec(
            num_scalar_prefetch=0,
            grid=(N,),
            in_specs=[
                pl.BlockSpec((1, HW, C), lambda n: (n, 0, 0)),
                _full_spec((F, HW)),
                _full_spec((F - 1, HW, C)),
                _full_spec((HW, HW)),
                _full_spec((HW, HW)),
                _full_spec((1, 1)),
                _full_spec((1, 1)),
            ],
            out_specs=[out_block_pool, out_block_sp],
            scratch_shapes=[pltpu.VMEM((F, C), jnp.float32)],
        ),
        compiler_params=pltpu.CompilerParams(
            dimension_semantics=("parallel",),
            vmem_limit_bytes=_vmem_limit(pool_vmem)),
        cost_estimate=pl.CostEstimate(
            flops=int(N * (2 * F * HW * C + 2 * (F - 1) * HW * C
                           + 4 * HW * HW + 4 * HW * C)),
            transcendentals=int(N * HW),
            bytes_accessed=int(N * pool_io + pool_weight_bytes)),
    )(x_hwc, jnp.asarray(PavgT, dtype=jnp.bfloat16),
      jnp.asarray(mask_add, dtype=jnp.bfloat16),
      jnp.asarray(msp_max, dtype=jnp.bfloat16),
      jnp.asarray(msp_mean, dtype=jnp.bfloat16),
      spbn_s.reshape(1, 1), spbn_b.reshape(1, 1))

    # -------------------- stage 2: batched channel MLP --------------------
    # Rearrange first 1x1-conv weight (R, F*C) from the SPP flatten order
    # [size1: c | size2: C + 4c + b | size3: 5C + 9c + b] into (F*C, R) matching
    # the pooled (bin-major, channel-minor) layout.
    w1 = np.asarray(params['w1'])
    idx = np.zeros((F, C), np.int64)
    idx[0] = np.arange(C)
    for b in range(4):
        idx[1 + b] = C + np.arange(C) * 4 + b
    for b in range(9):
        idx[5 + b] = 5 * C + np.arange(C) * 9 + b
    w1_r = np.ascontiguousarray(np.transpose(w1[:, idx], (1, 2, 0)).reshape(FC, R))
    w1_b16 = jnp.asarray(w1_r, dtype=jnp.bfloat16)                   # (F*C, R)
    w2t_b16 = jnp.asarray(params['w2']).T.astype(jnp.bfloat16)       # (R, C)

    chbn_s, chbn_b = _bn_fold(params['bn_ch_g'], params['bn_ch_b'],
                              params['bn_ch_rm'], params['bn_ch_rv'])

    pooled_flat = pooled.reshape(N, FC)                              # contiguous
    TK1 = _pick_k_tile(FC, R, 2, min(8 << 20, _VMEM_CAP // 8))
    gk1 = FC // TK1
    ch_vmem = (2 * (N * TK1 * 4 + TK1 * R * 2 + R * C * 2 + 2 * C * 4 + N * C * 4)
               + N * R * 4)

    ch_scale = pl.pallas_call(
        channel_mlp_kernel,
        out_shape=jax.ShapeDtypeStruct((N, C), jnp.float32),
        grid_spec=pltpu.PrefetchScalarGridSpec(
            num_scalar_prefetch=0,
            grid=(gk1,),
            in_specs=[
                pl.BlockSpec((N, TK1), lambda k: (0, k)),
                pl.BlockSpec((TK1, R), lambda k: (k, 0)),
                _full_spec((R, C)),
                _full_spec((1, C)),
                _full_spec((1, C)),
            ],
            out_specs=pl.BlockSpec((N, C), lambda k: (0, 0)),
            scratch_shapes=[pltpu.VMEM((N, R), jnp.float32)],
        ),
        compiler_params=pltpu.CompilerParams(
            dimension_semantics=("arbitrary",),
            vmem_limit_bytes=_vmem_limit(ch_vmem)),
        cost_estimate=pl.CostEstimate(
            flops=int(2 * N * FC * R + 2 * N * R * C),
            transcendentals=int(N * C),
            bytes_accessed=int(N * FC * 4 + FC * R * 2 + R * C * 2 + N * C * 4)),
    )(pooled_flat, w1_b16, w2t_b16, chbn_s.reshape(1, C), chbn_b.reshape(1, C))

    # -------------------- stage 3: apply scales --------------------
    # channel-block so both v7x TensorCores get work even at N == 1
    CB = C // 2 if (N < 2 and C % 256 == 0) else C
    gcb = C // CB
    ch3 = ch_scale.reshape(N, 1, C)
    apply_vmem = 2 * (3 * HW * CB * 4 + CB * 4 + HW * 4)

    io_block = pl.BlockSpec((1, HW, CB), lambda n, c: (n, 0, c))
    xid_hwc, xage_hwc = pl.pallas_call(
        apply_kernel,
        out_shape=(jax.ShapeDtypeStruct((N, HW, C), jnp.float32),
                   jax.ShapeDtypeStruct((N, HW, C), jnp.float32)),
        grid_spec=pltpu.PrefetchScalarGridSpec(
            num_scalar_prefetch=0,
            grid=(N, gcb),
            in_specs=[
                io_block,
                pl.BlockSpec((1, 1, CB), lambda n, c: (n, 0, c)),
                pl.BlockSpec((1, HW, 1), lambda n, c: (n, 0, 0)),
            ],
            out_specs=[io_block, io_block],
        ),
        compiler_params=pltpu.CompilerParams(
            dimension_semantics=("parallel", "parallel"),
            vmem_limit_bytes=_vmem_limit(apply_vmem)),
        cost_estimate=pl.CostEstimate(
            flops=int(4 * N * HW * C), transcendentals=0,
            bytes_accessed=int(N * (3 * HW * C * 4 + C * 4 + HW * 4))),
    )(x_hwc, ch3, sp_scale)

    # glue: NCHW views of x_id / x_age for the module's return values
    xid_nchw = jnp.transpose(xid_hwc.reshape(N, H, W, C), (0, 3, 1, 2))
    xage_nchw = jnp.transpose(xage_hwc.reshape(N, H, W, C), (0, 3, 1, 2))

    # ---- stage 4: output_layer (BN2d + Dropout(eval) + Flatten + Linear + BN1d) ----
    # Both BNs are affine in eval mode -> fold exactly into the Linear.  The
    # Linear consumes the (N, HW*C) layout directly (weight rows permuted from
    # PyTorch's c*HW+hw flatten order to hw*C+c), so no activation transpose.
    bn2_s, bn2_b = _bn_fold(params['bn2_g'], params['bn2_b'],
                            params['bn2_rm'], params['bn2_rv'])      # (C,)
    bn1_s, bn1_b = _bn_fold(params['bn1_g'], params['bn1_b'],
                            params['bn1_rm'], params['bn1_rv'])      # (E,)

    perm = (np.arange(C)[None, :] * HW + np.arange(HW)[:, None]).reshape(-1)
    w_r = jnp.asarray(params['w_lin'])[:, perm].T                    # (K, E)
    s_row = jnp.tile(bn2_s, HW)                                      # (K,)
    b_row = jnp.tile(bn2_b, HW)                                      # (K,)
    w_eff = (w_r * s_row[:, None]) * bn1_s[None, :]
    b_eff = (jnp.dot(b_row, w_r) + params['b_lin']) * bn1_s + bn1_b  # (E,)
    w_eff_b16 = w_eff.astype(jnp.bfloat16)

    xid_flat = xid_hwc.reshape(N, K)            # contiguous reshape, f32

    TE = 256 if (E > 256 and E % 256 == 0) else E
    # large K tiles (multiple of 128, independent of C) to amortize DMA/step
    # overhead on the HBM-bound weight stream; gen-aware cap for v7x's 64 MiB.
    TK = _pick_k_tile(K, TE, 2, min(16 << 20, _VMEM_CAP // 5))
    grid_e, grid_k = E // TE, K // TK

    emb_vmem = 2 * (N * TK * 4 + TK * TE * 2 + TE * 4 + N * TE * 4) + N * TE * 4

    emb = pl.pallas_call(
        embed_kernel,
        out_shape=jax.ShapeDtypeStruct((N, E), jnp.float32),
        grid_spec=pltpu.PrefetchScalarGridSpec(
            num_scalar_prefetch=0,
            grid=(grid_e, grid_k),
            in_specs=[
                pl.BlockSpec((N, TK), lambda e, k: (0, k)),
                pl.BlockSpec((TK, TE), lambda e, k: (k, e)),
                pl.BlockSpec((1, TE), lambda e, k: (0, e)),
            ],
            out_specs=pl.BlockSpec((N, TE), lambda e, k: (0, e)),
            scratch_shapes=[pltpu.VMEM((N, TE), jnp.float32)],
        ),
        compiler_params=pltpu.CompilerParams(
            dimension_semantics=("parallel", "arbitrary"),
            vmem_limit_bytes=_vmem_limit(emb_vmem)),
        cost_estimate=pl.CostEstimate(
            flops=int(2 * N * K * E), transcendentals=0,
            bytes_accessed=int(N * K * 4 + K * E * 2 + E * 4 + N * E * 4)),
    )(xid_flat, w_eff_b16, b_eff.reshape(1, E))

    return emb, xid_nchw, xage_nchw


# ----------------------------------------------------------------------------
# deterministic parameter init (mirrors _initialize_weights)
# ----------------------------------------------------------------------------
def init_params(key, C, H, W, E, reduction=16):
    chans = C * NUM_BINS
    R = chans // reduction
    HW = H * W
    ks = jax.random.split(key, 4)

    def xavier(k, shape, fan_in, fan_out):
        b = float(np.sqrt(6.0 / (fan_in + fan_out)))
        return jax.random.uniform(k, shape, jnp.float32, -b, b)

    p = {}
    p['w_sp'] = xavier(ks[0], (1, 2, 7, 7), 2 * 49, 1 * 49)     # spatial conv
    p['w1'] = xavier(ks[1], (R, chans), chans, R)               # 1x1 conv #1
    p['w2'] = xavier(ks[2], (C, R), R, C)                       # 1x1 conv #2
    p['w_lin'] = xavier(ks[3], (E, C * HW), C * HW, E)          # Linear
    p['b_lin'] = jnp.zeros((E,), jnp.float32)
    for name, n in (('bn_sp', 1), ('bn_ch', C), ('bn2', C), ('bn1', E)):
        p[name + '_g'] = jnp.ones((n,), jnp.float32)
        p[name + '_b'] = jnp.zeros((n,), jnp.float32)
        p[name + '_rm'] = jnp.zeros((n,), jnp.float32)
        p[name + '_rv'] = jnp.ones((n,), jnp.float32)
    return p


# ----------------------------------------------------------------------------
# pure-JAX reference (independent implementation, NCHW, f32/HIGHEST)
# ----------------------------------------------------------------------------
def ref_forward(x, p):
    N, C, H, W = x.shape

    def adaptive_pool(x, s, mode):
        rows = []
        for (r0, r1) in _bins(H, s):
            cols = []
            for (c0, c1) in _bins(W, s):
                patch = x[:, :, r0:r1, c0:c1]
                v = patch.mean(axis=(2, 3)) if mode == 'avg' else patch.max(axis=(2, 3))
                cols.append(v)
            rows.append(jnp.stack(cols, axis=-1))
        return jnp.stack(rows, axis=-2)                      # (N, C, s, s)

    def spp(x, mode):
        return jnp.concatenate(
            [adaptive_pool(x, s, mode).reshape(N, -1) for s in POOL_SIZES], axis=1)

    def bn(v, g, b, rm, rv):
        return (v - rm) / jnp.sqrt(rv + EPS) * g + b

    channel_input = spp(x, 'avg') + spp(x, 'max')            # (N, 14C)
    hidden = jax.nn.relu(jnp.dot(channel_input, p['w1'].T, precision=HIGH))
    ch_pre = jnp.dot(hidden, p['w2'].T, precision=HIGH)
    ch_pre = bn(ch_pre, p['bn_ch_g'], p['bn_ch_b'], p['bn_ch_rm'], p['bn_ch_rv'])
    ch_scale = jax.nn.sigmoid(ch_pre)[:, :, None, None]

    sp_in = jnp.stack([x.max(axis=1), x.mean(axis=1)], axis=1)  # (N, 2, H, W)
    sp_pre = lax.conv_general_dilated(sp_in, p['w_sp'], (1, 1), ((3, 3), (3, 3)),
                                      dimension_numbers=('NCHW', 'OIHW', 'NCHW'),
                                      precision=HIGH)
    sp_pre = bn(sp_pre, p['bn_sp_g'][None, :, None, None],
                p['bn_sp_b'][None, :, None, None],
                p['bn_sp_rm'][None, :, None, None],
                p['bn_sp_rv'][None, :, None, None])
    sp_scale = jax.nn.sigmoid(sp_pre)                         # (N, 1, H, W)

    x_age = (x * ch_scale + x * sp_scale) * 0.5
    x_id = x - x_age

    xb = bn(x_id, p['bn2_g'][None, :, None, None], p['bn2_b'][None, :, None, None],
            p['bn2_rm'][None, :, None, None], p['bn2_rv'][None, :, None, None])
    flat = xb.reshape(N, -1)
    emb = jnp.dot(flat, p['w_lin'].T, precision=HIGH) + p['b_lin']
    emb = bn(emb, p['bn1_g'], p['bn1_b'], p['bn1_rm'], p['bn1_rv'])
    return emb, x_id, x_age


if __name__ == "__main__":
    # Small, module-consistent shapes: backbone output feature map
    # (real model: C=1024, 7x7, emb=512  ->  small: C=128, 4x4, emb=128).
    N, C, H, W, E = 2, 128, 4, 4, 128
    key = jax.random.PRNGKey(0)
    kx, kp = jax.random.split(key)
    feats = jax.random.normal(kx, (N, C, H, W), jnp.float32)
    params = init_params(kp, C, H, W, E)

    emb, x_id, x_age = densenet_aifr_pallas(feats, params)
    emb = jax.block_until_ready(emb)

    emb_ref, xid_ref, xage_ref = ref_forward(feats, params)
    # bf16 weight/activation streaming in the kernels -> relaxed tolerances
    assert jnp.allclose(x_id, xid_ref, atol=3e-2, rtol=3e-2), \
        f"x_id mismatch, max |d|={float(jnp.max(jnp.abs(x_id - xid_ref)))}"
    assert jnp.allclose(x_age, xage_ref, atol=3e-2, rtol=3e-2), \
        f"x_age mismatch, max |d|={float(jnp.max(jnp.abs(x_age - xage_ref)))}"
    assert jnp.allclose(emb, emb_ref, atol=8e-2, rtol=5e-2), \
        f"emb mismatch, max |d|={float(jnp.max(jnp.abs(emb - emb_ref)))}"
    print("KERNEL_OK")
</pallas_src>

<mosaic_0001>
module attributes {stable_mosaic.version = 11 : i64} {
  func.func @pool_kernel(%arg0: i32, %arg1: memref<1x16x128xf32, #tpu.memory_space<vmem>>, %arg2: memref<14x16xbf16, #tpu.memory_space<vmem>>, %arg3: memref<13x16x128xbf16, #tpu.memory_space<vmem>>, %arg4: memref<16x16xbf16, #tpu.memory_space<vmem>>, %arg5: memref<16x16xbf16, #tpu.memory_space<vmem>>, %arg6: memref<1x1xf32, #tpu.memory_space<vmem>>, %arg7: memref<1x1xf32, #tpu.memory_space<vmem>>, %arg8: memref<1x14x128xf32, #tpu.memory_space<vmem>>, %arg9: memref<1x16x1xf32, #tpu.memory_space<vmem>>, %arg10: memref<14x128xf32, #tpu.memory_space<vmem>>) attributes {dimension_semantics = [#tpu.dimension_semantics<parallel>], iteration_bounds = array<i64: 2>, scalar_prefetch = 0 : i64, scratch_operands = 1 : i64, tpu.core_type = #tpu.core_type<tc>, window_params = [{transform_indices = @transform_0, window_bounds = array<i64: 1, 16, 128>}, {pipeline_mode = #tpu.pipeline_mode<synchronous>, transform_indices = @transform_1, window_bounds = array<i64: 14, 16>}, {pipeline_mode = #tpu.pipeline_mode<synchronous>, transform_indices = @transform_2, window_bounds = array<i64: 13, 16, 128>}, {pipeline_mode = #tpu.pipeline_mode<synchronous>, transform_indices = @transform_3, window_bounds = array<i64: 16, 16>}, {pipeline_mode = #tpu.pipeline_mode<synchronous>, transform_indices = @transform_4, window_bounds = array<i64: 16, 16>}, {pipeline_mode = #tpu.pipeline_mode<synchronous>, transform_indices = @transform_5, window_bounds = array<i64: 1, 1>}, {pipeline_mode = #tpu.pipeline_mode<synchronous>, transform_indices = @transform_6, window_bounds = array<i64: 1, 1>}, {transform_indices = @transform_7, window_bounds = array<i64: 1, 14, 128>}, {transform_indices = @transform_8, window_bounds = array<i64: 1, 16, 1>}]} {
    %c0 = arith.constant 0 : index
    %c0_0 = arith.constant 0 : index
    %c0_1 = arith.constant 0 : index
    %0 = vector.load %arg1[%c0, %c0_0, %c0_1] : memref<1x16x128xf32, #tpu.memory_space<vmem>>, vector<1x16x128xf32>
    %1 = vector.shape_cast %0 : vector<1x16x128xf32> to vector<16x128xf32>
    %2 = arith.truncf %1 : vector<16x128xf32> to vector<16x128xbf16>
    %c0_2 = arith.constant 0 : index
    %c0_3 = arith.constant 0 : index
    %3 = vector.load %arg2[%c0_2, %c0_3] : memref<14x16xbf16, #tpu.memory_space<vmem>>, vector<14x16xbf16>
    %cst = arith.constant dense<0.000000e+00> : vector<14x128xf32>
    %4 = tpu.matmul %3, %2, %cst {dimension_numbers = #tpu.dot_dimension_numbers<[1], [0], [0], [1], [0, 0, 1, 1], [], []>} : vector<14x16xbf16>, vector<16x128xbf16>, vector<14x128xf32> -> vector<14x128xf32>
    %5 = vector.extract_strided_slice %4 {offsets = [0, 0], sizes = [1, 128], strides = [1, 1]} : vector<14x128xf32> to vector<1x128xf32>
    %cst_4 = arith.constant dense<0xFF800000> : vector<128xf32>
    %6 = vector.multi_reduction <maximumf>, %1, %cst_4 [0] : vector<16x128xf32> to vector<128xf32>
    %7 = vector.shape_cast %6 : vector<128xf32> to vector<1x128xf32>
    %8 = arith.addf %5, %7 : vector<1x128xf32>
    %c0_5 = arith.constant 0 : index
    %c0_6 = arith.constant 0 : index
    %9 = vector.load %arg10[%c0_5, %c0_6] : memref<14x128xf32, #tpu.memory_space<vmem>>, vector<1x128xf32>
    tpu.vector_store %arg10[%c0_5, %c0_6], %8 {strides = array<i32>} : memref<14x128xf32, #tpu.memory_space<vmem>>, vector<1x128xf32>,
    %c0_7 = arith.constant 0 : index
    %c0_8 = arith.constant 0 : index
    %c0_9 = arith.constant 0 : index
    %10 = vector.load %arg3[%c0_7, %c0_8, %c0_9] : memref<13x16x128xbf16, #tpu.memory_space<vmem>>, vector<1x16x128xbf16>
    %11 = vector.shape_cast %10 : vector<1x16x128xbf16> to vector<16x128xbf16>
    %12 = arith.extf %11 : vector<16x128xbf16> to vector<16x128xf32>
    %13 = arith.addf %1, %12 : vector<16x128xf32>
    %cst_10 = arith.constant dense<0xFF800000> : vector<128xf32>
    %14 = vector.multi_reduction <maximumf>, %13, %cst_10 [0] : vector<16x128xf32> to vector<128xf32>
    %15 = vector.shape_cast %14 : vector<128xf32> to vector<1x128xf32>
    %16 = vector.extract_strided_slice %4 {offsets = [1, 0], sizes = [1, 128], strides = [1, 1]} : vector<14x128xf32> to vector<1x128xf32>
    %17 = arith.addf %16, %15 : vector<1x128xf32>
    %c1 = arith.constant 1 : index
    %c0_11 = arith.constant 0 : index
    %18 = vector.load %arg10[%c1, %c0_11] : memref<14x128xf32, #tpu.memory_space<vmem>>, vector<1x128xf32>
    tpu.vector_store %arg10[%c1, %c0_11], %17 {strides = array<i32>} : memref<14x128xf32, #tpu.memory_space<vmem>>, vector<1x128xf32>,
    %c1_12 = arith.constant 1 : index
    %c0_13 = arith.constant 0 : index
    %c0_14 = arith.constant 0 : index
    %19 = vector.load %arg3[%c1_12, %c0_13, %c0_14] : memref<13x16x128xbf16, #tpu.memory_space<vmem>>, vector<1x16x128xbf16>
    %20 = vector.shape_cast %19 : vector<1x16x128xbf16> to vector<16x128xbf16>
    %21 = arith.extf %20 : vector<16x128xbf16> to vector<16x128xf32>
    %22 = arith.addf %1, %21 : vector<16x128xf32>
    %cst_15 = arith.constant dense<0xFF800000> : vector<128xf32>
    %23 = vector.multi_reduction <maximumf>, %22, %cst_15 [0] : vector<16x128xf32> to vector<128xf32>
    %24 = vector.shape_cast %23 : vector<128xf32> to vector<1x128xf32>
    %25 = vector.extract_strided_slice %4 {offsets = [2, 0], sizes = [1, 128], strides = [1, 1]} : vector<14x128xf32> to vector<1x128xf32>
    %26 = arith.addf %25, %24 : vector<1x128xf32>
    %c2 = arith.constant 2 : index
    %c0_16 = arith.constant 0 : index
    %27 = vector.load %arg10[%c2, %c0_16] : memref<14x128xf32, #tpu.memory_space<vmem>>, vector<1x128xf32>
    tpu.vector_store %arg10[%c2, %c0_16], %26 {strides = array<i32>} : memref<14x128xf32, #tpu.memory_space<vmem>>, vector<1x128xf32>,
    %c2_17 = arith.constant 2 : index
    %c0_18 = arith.constant 0 : index
    %c0_19 = arith.constant 0 : index
    %28 = vector.load %arg3[%c2_17, %c0_18, %c0_19] : memref<13x16x128xbf16, #tpu.memory_space<vmem>>, vector<1x16x128xbf16>
    %29 = vector.shape_cast %28 : vector<1x16x128xbf16> to vector<16x128xbf16>
    %30 = arith.extf %29 : vector<16x128xbf16> to vector<16x128xf32>
    %31 = arith.addf %1, %30 : vector<16x128xf32>
    %cst_20 = arith.constant dense<0xFF800000> : vector<128xf32>
    %32 = vector.multi_reduction <maximumf>, %31, %cst_20 [0] : vector<16x128xf32> to vector<128xf32>
    %33 = vector.shape_cast %32 : vector<128xf32> to vector<1x128xf32>
    %34 = vector.extract_strided_slice %4 {offsets = [3, 0], sizes = [1, 128], strides = [1, 1]} : vector<14x128xf32> to vector<1x128xf32>
    %35 = arith.addf %34, %33 : vector<1x128xf32>
    %c3 = arith.constant 3 : index
    %c0_21 = arith.constant 0 : index
    %36 = vector.load %arg10[%c3, %c0_21] : memref<14x128xf32, #tpu.memory_space<vmem>>, vector<1x128xf32>
    tpu.vector_store %arg10[%c3, %c0_21], %35 {strides = array<i32>} : memref<14x128xf32, #tpu.memory_space<vmem>>, vector<1x128xf32>,
    %c3_22 = arith.constant 3 : index
    %c0_23 = arith.constant 0 : index
    %c0_24 = arith.constant 0 : index
    %37 = vector.load %arg3[%c3_22, %c0_23, %c0_24] : memref<13x16x128xbf16, #tpu.memory_space<vmem>>, vector<1x16x128xbf16>
    %38 = vector.shape_cast %37 : vector<1x16x128xbf16> to vector<16x128xbf16>
    %39 = arith.extf %38 : vector<16x128xbf16> to vector<16x128xf32>
    %40 = arith.addf %1, %39 : vector<16x128xf32>
    %cst_25 = arith.constant dense<0xFF800000> : vector<128xf32>
    %41 = vector.multi_reduction <maximumf>, %40, %cst_25 [0] : vector<16x128xf32> to vector<128xf32>
    %42 = vector.shape_cast %41 : vector<128xf32> to vector<1x128xf32>
    %43 = vector.extract_strided_slice %4 {offsets = [4, 0], sizes = [1, 128], strides = [1, 1]} : vector<14x128xf32> to vector<1x128xf32>
    %44 = arith.addf %43, %42 : vector<1x128xf32>
    %c4 = arith.constant 4 : index
    %c0_26 = arith.constant 0 : index
    %45 = vector.load %arg10[%c4, %c0_26] : memref<14x128xf32, #tpu.memory_space<vmem>>, vector<1x128xf32>
    tpu.vector_store %arg10[%c4, %c0_26], %44 {strides = array<i32>} : memref<14x128xf32, #tpu.memory_space<vmem>>, vector<1x128xf32>,
    %c4_27 = arith.constant 4 : index
    %c0_28 = arith.constant 0 : index
    %c0_29 = arith.constant 0 : index
    %46 = vector.load %arg3[%c4_27, %c0_28, %c0_29] : memref<13x16x128xbf16, #tpu.memory_space<vmem>>, vector<1x16x128xbf16>
    %47 = vector.shape_cast %46 : vector<1x16x128xbf16> to vector<16x128xbf16>
    %48 = arith.extf %47 : vector<16x128xbf16> to vector<16x128xf32>
    %49 = arith.addf %1, %48 : vector<16x128xf32>
    %cst_30 = arith.constant dense<0xFF800000> : vector<128xf32>
    %50 = vector.multi_reduction <maximumf>, %49, %cst_30 [0] : vector<16x128xf32> to vector<128xf32>
    %51 = vector.shape_cast %50 : vector<128xf32> to vector<1x128xf32>
    %52 = vector.extract_strided_slice %4 {offsets = [5, 0], sizes = [1, 128], strides = [1, 1]} : vector<14x128xf32> to vector<1x128xf32>
    %53 = arith.addf %52, %51 : vector<1x128xf32>
    %c5 = arith.constant 5 : index
    %c0_31 = arith.constant 0 : index
    %54 = vector.load %arg10[%c5, %c0_31] : memref<14x128xf32, #tpu.memory_space<vmem>>, vector<1x128xf32>
    tpu.vector_store %arg10[%c5, %c0_31], %53 {strides = array<i32>} : memref<14x128xf32, #tpu.memory_space<vmem>>, vector<1x128xf32>,
    %c5_32 = arith.constant 5 : index
    %c0_33 = arith.constant 0 : index
    %c0_34 = arith.constant 0 : index
    %55 = vector.load %arg3[%c5_32, %c0_33, %c0_34] : memref<13x16x128xbf16, #tpu.memory_space<vmem>>, vector<1x16x128xbf16>
    %56 = vector.shape_cast %55 : vector<1x16x128xbf16> to vector<16x128xbf16>
    %57 = arith.extf %56 : vector<16x128xbf16> to vector<16x128xf32>
    %58 = arith.addf %1, %57 : vector<16x128xf32>
    %cst_35 = arith.constant dense<0xFF800000> : vector<128xf32>
    %59 = vector.multi_reduction <maximumf>, %58, %cst_35 [0] : vector<16x128xf32> to vector<128xf32>
    %60 = vector.shape_cast %59 : vector<128xf32> to vector<1x128xf32>
    %61 = vector.extract_strided_slice %4 {offsets = [6, 0], sizes = [1, 128], strides = [1, 1]} : vector<14x128xf32> to vector<1x128xf32>
    %62 = arith.addf %61, %60 : vector<1x128xf32>
    %c6 = arith.constant 6 : index
    %c0_36 = arith.constant 0 : index
    %63 = vector.load %arg10[%c6, %c0_36] : memref<14x128xf32, #tpu.memory_space<vmem>>, vector<1x128xf32>
    tpu.vector_store %arg10[%c6, %c0_36], %62 {strides = array<i32>} : memref<14x128xf32, #tpu.memory_space<vmem>>, vector<1x128xf32>,
    %c6_37 = arith.constant 6 : index
    %c0_38 = arith.constant 0 : index
    %c0_39 = arith.constant 0 : index
    %64 = vector.load %arg3[%c6_37, %c0_38, %c0_39] : memref<13x16x128xbf16, #tpu.memory_space<vmem>>, vector<1x16x128xbf16>
    %65 = vector.shape_cast %64 : vector<1x16x128xbf16> to vector<16x128xbf16>
    %66 = arith.extf %65 : vector<16x128xbf16> to vector<16x128xf32>
    %67 = arith.addf %1, %66 : vector<16x128xf32>
    %cst_40 = arith.constant dense<0xFF800000> : vector<128xf32>
    %68 = vector.multi_reduction <maximumf>, %67, %cst_40 [0] : vector<16x128xf32> to vector<128xf32>
    %69 = vector.shape_cast %68 : vector<128xf32> to vector<1x128xf32>
    %70 = vector.extract_strided_slice %4 {offsets = [7, 0], sizes = [1, 128], strides = [1, 1]} : vector<14x128xf32> to vector<1x128xf32>
    %71 = arith.addf %70, %69 : vector<1x128xf32>
    %c7 = arith.constant 7 : index
    %c0_41 = arith.constant 0 : index
    %72 = vector.load %arg10[%c7, %c0_41] : memref<14x128xf32, #tpu.memory_space<vmem>>, vector<1x128xf32>
    tpu.vector_store %arg10[%c7, %c0_41], %71 {strides = array<i32>} : memref<14x128xf32, #tpu.memory_space<vmem>>, vector<1x128xf32>,
    %c7_42 = arith.constant 7 : index
    %c0_43 = arith.constant 0 : index
    %c0_44 = arith.constant 0 : index
    %73 = vector.load %arg3[%c7_42, %c0_43, %c0_44] : memref<13x16x128xbf16, #tpu.memory_space<vmem>>, vector<1x16x128xbf16>
    %74 = vector.shape_cast %73 : vector<1x16x128xbf16> to vector<16x128xbf16>
    %75 = arith.extf %74 : vector<16x128xbf16> to vector<16x128xf32>
    %76 = arith.addf %1, %75 : vector<16x128xf32>
    %cst_45 = arith.constant dense<0xFF800000> : vector<128xf32>
    %77 = vector.multi_reduction <maximumf>, %76, %cst_45 [0] : vector<16x128xf32> to vector<128xf32>
    %78 = vector.shape_cast %77 : vector<128xf32> to vector<1x128xf32>
    %79 = vector.extract_strided_slice %4 {offsets = [8, 0], sizes = [1, 128], strides = [1, 1]} : vector<14x128xf32> to vector<1x128xf32>
    %80 = arith.addf %79, %78 : vector<1x128xf32>
    %c8 = arith.constant 8 : index
    %c0_46 = arith.constant 0 : index
    %81 = vector.load %arg10[%c8, %c0_46] : memref<14x128xf32, #tpu.memory_space<vmem>>, vector<1x128xf32>
    tpu.vector_store %arg10[%c8, %c0_46], %80 {strides = array<i32>} : memref<14x128xf32, #tpu.memory_space<vmem>>, vector<1x128xf32>,
    %c8_47 = arith.constant 8 : index
    %c0_48 = arith.constant 0 : index
    %c0_49 = arith.constant 0 : index
    %82 = vector.load %arg3[%c8_47, %c0_48, %c0_49] : memref<13x16x128xbf16, #tpu.memory_space<vmem>>, vector<1x16x128xbf16>
    %83 = vector.shape_cast %82 : vector<1x16x128xbf16> to vector<16x128xbf16>
    %84 = arith.extf %83 : vector<16x128xbf16> to vector<16x128xf32>
    %85 = arith.addf %1, %84 : vector<16x128xf32>
    %cst_50 = arith.constant dense<0xFF800000> : vector<128xf32>
    %86 = vector.multi_reduction <maximumf>, %85, %cst_50 [0] : vector<16x128xf32> to vector<128xf32>
    %87 = vector.shape_cast %86 : vector<128xf32> to vector<1x128xf32>
    %88 = vector.extract_strided_slice %4 {offsets = [9, 0], sizes = [1, 128], strides = [1, 1]} : vector<14x128xf32> to vector<1x128xf32>
    %89 = arith.addf %88, %87 : vector<1x128xf32>
    %c9 = arith.constant 9 : index
    %c0_51 = arith.constant 0 : index
    %90 = vector.load %arg10[%c9, %c0_51] : memref<14x128xf32, #tpu.memory_space<vmem>>, vector<1x128xf32>
    tpu.vector_store %arg10[%c9, %c0_51], %89 {strides = array<i32>} : memref<14x128xf32, #tpu.memory_space<vmem>>, vector<1x128xf32>,
    %c9_52 = arith.constant 9 : index
    %c0_53 = arith.constant 0 : index
    %c0_54 = arith.constant 0 : index
    %91 = vector.load %arg3[%c9_52, %c0_53, %c0_54] : memref<13x16x128xbf16, #tpu.memory_space<vmem>>, vector<1x16x128xbf16>
    %92 = vector.shape_cast %91 : vector<1x16x128xbf16> to vector<16x128xbf16>
    %93 = arith.extf %92 : vector<16x128xbf16> to vector<16x128xf32>
    %94 = arith.addf %1, %93 : vector<16x128xf32>
    %cst_55 = arith.constant dense<0xFF800000> : vector<128xf32>
    %95 = vector.multi_reduction <maximumf>, %94, %cst_55 [0] : vector<16x128xf32> to vector<128xf32>
    %96 = vector.shape_cast %95 : vector<128xf32> to vector<1x128xf32>
    %97 = vector.extract_strided_slice %4 {offsets = [10, 0], sizes = [1, 128], strides = [1, 1]} : vector<14x128xf32> to vector<1x128xf32>
    %98 = arith.addf %97, %96 : vector<1x128xf32>
    %c10 = arith.constant 10 : index
    %c0_56 = arith.constant 0 : index
    %99 = vector.load %arg10[%c10, %c0_56] : memref<14x128xf32, #tpu.memory_space<vmem>>, vector<1x128xf32>
    tpu.vector_store %arg10[%c10, %c0_56], %98 {strides = array<i32>} : memref<14x128xf32, #tpu.memory_space<vmem>>, vector<1x128xf32>,
    %c10_57 = arith.constant 10 : index
    %c0_58 = arith.constant 0 : index
    %c0_59 = arith.constant 0 : index
    %100 = vector.load %arg3[%c10_57, %c0_58, %c0_59] : memref<13x16x128xbf16, #tpu.memory_space<vmem>>, vector<1x16x128xbf16>
    %101 = vector.shape_cast %100 : vector<1x16x128xbf16> to vector<16x128xbf16>
    %102 = arith.extf %101 : vector<16x128xbf16> to vector<16x128xf32>
    %103 = arith.addf %1, %102 : vector<16x128xf32>
    %cst_60 = arith.constant dense<0xFF800000> : vector<128xf32>
    %104 = vector.multi_reduction <maximumf>, %103, %cst_60 [0] : vector<16x128xf32> to vector<128xf32>
    %105 = vector.shape_cast %104 : vector<128xf32> to vector<1x128xf32>
    %106 = vector.extract_strided_slice %4 {offsets = [11, 0], sizes = [1, 128], strides = [1, 1]} : vector<14x128xf32> to vector<1x128xf32>
    %107 = arith.addf %106, %105 : vector<1x128xf32>
    %c11 = arith.constant 11 : index
    %c0_61 = arith.constant 0 : index
    %108 = vector.load %arg10[%c11, %c0_61] : memref<14x128xf32, #tpu.memory_space<vmem>>, vector<1x128xf32>
    tpu.vector_store %arg10[%c11, %c0_61], %107 {strides = array<i32>} : memref<14x128xf32, #tpu.memory_space<vmem>>, vector<1x128xf32>,
    %c11_62 = arith.constant 11 : index
    %c0_63 = arith.constant 0 : index
    %c0_64 = arith.constant 0 : index
    %109 = vector.load %arg3[%c11_62, %c0_63, %c0_64] : memref<13x16x128xbf16, #tpu.memory_space<vmem>>, vector<1x16x128xbf16>
    %110 = vector.shape_cast %109 : vector<1x16x128xbf16> to vector<16x128xbf16>
    %111 = arith.extf %110 : vector<16x128xbf16> to vector<16x128xf32>
    %112 = arith.addf %1, %111 : vector<16x128xf32>
    %cst_65 = arith.constant dense<0xFF800000> : vector<128xf32>
    %113 = vector.multi_reduction <maximumf>, %112, %cst_65 [0] : vector<16x128xf32> to vector<128xf32>
    %114 = vector.shape_cast %113 : vector<128xf32> to vector<1x128xf32>
    %115 = vector.extract_strided_slice %4 {offsets = [12, 0], sizes = [1, 128], strides = [1, 1]} : vector<14x128xf32> to vector<1x128xf32>
    %116 = arith.addf %115, %114 : vector<1x128xf32>
    %c12 = arith.constant 12 : index
    %c0_66 = arith.constant 0 : index
    %117 = vector.load %arg10[%c12, %c0_66] : memref<14x128xf32, #tpu.memory_space<vmem>>, vector<1x128xf32>
    tpu.vector_store %arg10[%c12, %c0_66], %116 {strides = array<i32>} : memref<14x128xf32, #tpu.memory_space<vmem>>, vector<1x128xf32>,
    %c12_67 = arith.constant 12 : index
    %c0_68 = arith.constant 0 : index
    %c0_69 = arith.constant 0 : index
    %118 = vector.load %arg3[%c12_67, %c0_68, %c0_69] : memref<13x16x128xbf16, #tpu.memory_space<vmem>>, vector<1x16x128xbf16>
    %119 = vector.shape_cast %118 : vector<1x16x128xbf16> to vector<16x128xbf16>
    %120 = arith.extf %119 : vector<16x128xbf16> to vector<16x128xf32>
    %121 = arith.addf %1, %120 : vector<16x128xf32>
    %cst_70 = arith.constant dense<0xFF800000> : vector<128xf32>
    %122 = vector.multi_reduction <maximumf>, %121, %cst_70 [0] : vector<16x128xf32> to vector<128xf32>
    %123 = vector.shape_cast %122 : vector<128xf32> to vector<1x128xf32>
    %124 = vector.extract_strided_slice %4 {offsets = [13, 0], sizes = [1, 128], strides = [1, 1]} : vector<14x128xf32> to vector<1x128xf32>
    %125 = arith.addf %124, %123 : vector<1x128xf32>
    %c13 = arith.constant 13 : index
    %c0_71 = arith.constant 0 : index
    %126 = vector.load %arg10[%c13, %c0_71] : memref<14x128xf32, #tpu.memory_space<vmem>>, vector<1x128xf32>
    tpu.vector_store %arg10[%c13, %c0_71], %125 {strides = array<i32>} : memref<14x128xf32, #tpu.memory_space<vmem>>, vector<1x128xf32>,
    %c0_72 = arith.constant 0 : index
    %c0_73 = arith.constant 0 : index
    %127 = vector.load %arg10[%c0_72, %c0_73] : memref<14x128xf32, #tpu.memory_space<vmem>>, vector<14x128xf32>
    %c0_74 = arith.constant 0 : index
    %c0_75 = arith.constant 0 : index
    %c0_76 = arith.constant 0 : index
    %128 = vector.load %arg8[%c0_74, %c0_75, %c0_76] : memref<1x14x128xf32, #tpu.memory_space<vmem>>, vector<1x14x128xf32>
    %129 = vector.shape_cast %128 : vector<1x14x128xf32> to vector<14x128xf32>
    %130 = vector.shape_cast %127 : vector<14x128xf32> to vector<1x14x128xf32>
    tpu.vector_store %arg8[%c0_74, %c0_75, %c0_76], %130 {strides = array<i32>} : memref<1x14x128xf32, #tpu.memory_space<vmem>>, vector<1x14x128xf32>,
    %cst_77 = arith.constant dense<0xFF800000> : vector<16xf32>
    %131 = vector.multi_reduction <maximumf>, %1, %cst_77 [1] : vector<16x128xf32> to vector<16xf32>
    %132 = vector.shape_cast %131 : vector<16xf32> to vector<16x1xf32>
    %133 = arith.truncf %132 : vector<16x1xf32> to vector<16x1xbf16>
    %cst_78 = arith.constant dense<0.000000e+00> : vector<16xf32>
    %134 = vector.multi_reduction <add>, %1, %cst_78 [1] : vector<16x128xf32> to vector<16xf32>
    %135 = vector.shape_cast %134 : vector<16xf32> to vector<16x1xf32>
    %cst_79 = arith.constant 1.280000e+02 : f32
    %136 = vector.broadcast %cst_79 : f32 to vector<16x1xf32>
    %137 = arith.divf %135, %136 : vector<16x1xf32>
    %138 = arith.truncf %137 : vector<16x1xf32> to vector<16x1xbf16>
    %c0_80 = arith.constant 0 : index
    %c0_81 = arith.constant 0 : index
    %139 = vector.load %arg4[%c0_80, %c0_81] : memref<16x16xbf16, #tpu.memory_space<vmem>>, vector<16x16xbf16>
    %cst_82 = arith.constant dense<0.000000e+00> : vector<16x1xf32>
    %140 = tpu.matmul %139, %133, %cst_82 {dimension_numbers = #tpu.dot_dimension_numbers<[1], [0], [0], [1], [0, 0, 1, 1], [], []>} : vector<16x16xbf16>, vector<16x1xbf16>, vector<16x1xf32> -> vector<16x1xf32>
    %c0_83 = arith.constant 0 : index
    %c0_84 = arith.constant 0 : index
    %141 = vector.load %arg5[%c0_83, %c0_84] : memref<16x16xbf16, #tpu.memory_space<vmem>>, vector<16x16xbf16>
    %cst_85 = arith.constant dense<0.000000e+00> : vector<16x1xf32>
    %142 = tpu.matmul %141, %138, %cst_85 {dimension_numbers = #tpu.dot_dimension_numbers<[1], [0], [0], [1], [0, 0, 1, 1], [], []>} : vector<16x16xbf16>, vector<16x1xbf16>, vector<16x1xf32> -> vector<16x1xf32>
    %143 = arith.addf %140, %142 : vector<16x1xf32>
    %c0_86 = arith.constant 0 : index
    %c0_87 = arith.constant 0 : index
    %144 = vector.load %arg6[%c0_86, %c0_87] : memref<1x1xf32, #tpu.memory_space<vmem>>, vector<1x1xf32>
    %145 = vector.broadcast %144 : vector<1x1xf32> to vector<16x1xf32>
    %146 = arith.mulf %143, %145 : vector<16x1xf32>
    %c0_88 = arith.constant 0 : index
    %c0_89 = arith.constant 0 : index
    %147 = vector.load %arg7[%c0_88, %c0_89] : memref<1x1xf32, #tpu.memory_space<vmem>>, vector<1x1xf32>
    %148 = vector.broadcast %147 : vector<1x1xf32> to vector<16x1xf32>
    %149 = arith.addf %146, %148 : vector<16x1xf32>
    %150 = arith.negf %149 : vector<16x1xf32>
    %151 = math.exp %150 : vector<16x1xf32>
    %cst_90 = arith.constant 1.000000e+00 : f32
    %152 = vector.broadcast %cst_90 : f32 to vector<16x1xf32>
    %153 = arith.addf %152, %151 : vector<16x1xf32>
    %154 = arith.divf %152, %153 : vector<16x1xf32>
    %c0_91 = arith.constant 0 : index
    %c0_92 = arith.constant 0 : index
    %c0_93 = arith.constant 0 : index
    %155 = vector.load %arg9[%c0_91, %c0_92, %c0_93] : memref<1x16x1xf32, #tpu.memory_space<vmem>>, vector<1x16x1xf32>
    %156 = vector.shape_cast %155 : vector<1x16x1xf32> to vector<16x1xf32>
    %157 = vector.shape_cast %154 : vector<16x1xf32> to vector<1x16x1xf32>
    tpu.vector_store %arg9[%c0_91, %c0_92, %c0_93], %157 {strides = array<i32>} : memref<1x16x1xf32, #tpu.memory_space<vmem>>, vector<1x16x1xf32>,
    return
  }
  func.func @transform_0(%arg0: i32) -> (i32, i32, i32) {
    %c0_i32 = arith.constant 0 : i32
    %c0_i32_0 = arith.constant 0 : i32
    %c0_i32_1 = arith.constant 0 : i32
    return %arg0, %c0_i32, %c0_i32_0 : i32, i32, i32
  }
  func.func @transform_1(%arg0: i32) -> (i32, i32) {
    %c0_i32 = arith.constant 0 : i32
    %c0_i32_0 = arith.constant 0 : i32
    %c0_i32_1 = arith.constant 0 : i32
    return %c0_i32, %c0_i32_0 : i32, i32
  }
  func.func @transform_2(%arg0: i32) -> (i32, i32, i32) {
    %c0_i32 = arith.constant 0 : i32
    %c0_i32_0 = arith.constant 0 : i32
    %c0_i32_1 = arith.constant 0 : i32
    %c0_i32_2 = arith.constant 0 : i32
    return %c0_i32, %c0_i32_0, %c0_i32_1 : i32, i32, i32
  }
  func.func @transform_3(%arg0: i32) -> (i32, i32) {
    %c0_i32 = arith.constant 0 : i32
    %c0_i32_0 = arith.constant 0 : i32
    %c0_i32_1 = arith.constant 0 : i32
    return %c0_i32, %c0_i32_0 : i32, i32
  }
  func.func @transform_4(%arg0: i32) -> (i32, i32) {
    %c0_i32 = arith.constant 0 : i32
    %c0_i32_0 = arith.constant 0 : i32
    %c0_i32_1 = arith.constant 0 : i32
    return %c0_i32, %c0_i32_0 : i32, i32
  }
  func.func @transform_5(%arg0: i32) -> (i32, i32) {
    %c0_i32 = arith.constant 0 : i32
    %c0_i32_0 = arith.constant 0 : i32
    %c0_i32_1 = arith.constant 0 : i32
    return %c0_i32, %c0_i32_0 : i32, i32
  }
  func.func @transform_6(%arg0: i32) -> (i32, i32) {
    %c0_i32 = arith.constant 0 : i32
    %c0_i32_0 = arith.constant 0 : i32
    %c0_i32_1 = arith.constant 0 : i32
    return %c0_i32, %c0_i32_0 : i32, i32
  }
  func.func @transform_7(%arg0: i32) -> (i32, i32, i32) {
    %c0_i32 = arith.constant 0 : i32
    %c0_i32_0 = arith.constant 0 : i32
    %c0_i32_1 = arith.constant 0 : i32
    return %arg0, %c0_i32, %c0_i32_0 : i32, i32, i32
  }
  func.func @transform_8(%arg0: i32) -> (i32, i32, i32) {
    %c0_i32 = arith.constant 0 : i32
    %c0_i32_0 = arith.constant 0 : i32
    %c0_i32_1 = arith.constant 0 : i32
    return %arg0, %c0_i32, %c0_i32_0 : i32, i32, i32
  }
}

</mosaic_0001>

<bundles_post_ra>
// kernel: tpu_custom_call.1
= control target key start
LH: loop header
LB: loop body
LE: loop exit
PB: predicated region body
PF: predicated region fallthrough
CT: control target
= control target key end

     0   :  { %s1544_s0 = inlined_call_operand.hbm [shape: f32[2,16,128], index: 0, kind: input, shape index: {}]   ;;  %s1545_s1 = inlined_call_operand.vmem [shape: bf16[14,16], index: 1, kind: input, shape index: {}]   ;;  %s1546_s2 = inlined_call_operand.hbm [shape: bf16[13,16,128], index: 2, kind: input, shape index: {}]   ;;  %s1547_s3 = inlined_call_operand.vmem [shape: bf16[16,16], index: 3, kind: input, shape index: {}]   ;;  %s1548_s4 = inlined_call_operand.hbm [shape: bf16[16,16], index: 4, kind: input, shape index: {}]   ;;  %s1549_s5 = inlined_call_operand.<no memory space> [shape: f32[1,1], index: 5, kind: input, shape index: {}]   ;;  %s1550_s7 = inlined_call_operand.vmem [shape: f32[2,14,128], index: 7, kind: output, shape index: {0}]   ;;  %s1551_s8 = inlined_call_operand.vmem [shape: f32[2,16,1], index: 8, kind: output, shape index: {1}]   ;;  %s1552_s6 = inlined_call_operand.<no memory space> [shape: f32[1,1], index: 6, kind: input, shape index: {}]  }
   0x1   :  { %v14_v0 = vstv %s1549_s5  ;;  %v16_v1 = vstv %s1552_s6 }
   0x2   :  { %15 = vst [vmem:[#allocation3] sm:$0x1] %v14_v0  ;;  %17 = vst [vmem:[#allocation4] sm:$0x1] %v16_v1 }
   0x3   :  { %18 = vsyncpa [#allocation6], 0 }
   0x4   :  { %20 = vsyncpa [#allocation6 + $0x1], 0 }
   0x5   :  { %21 = vsyncpa [#allocation8], 0  ;;  %s1289_s9 = smov 0   ;;  %s1291_s10 = smov 0  }
   0x6   :  { %s1293_s11 = smov 0   ;;  %s1295_s12 = smov 0  }
   0x7 LB: > { %s1308_s5 = sadd.s32 4294967295, %s1227_s12   ;;  %p47_p0 = scmp.ne.s32.totalorder %s1219_s10, %s1215_s9  ;;  %s1227_s12 = sphi %s1295_s12, %s1567_s12   ;;  %s1223_s11 = sphi %s1293_s11, %s1566_s11   ;;  %s1219_s10 = sphi %s1291_s10, %s1565_s10   ;;  %s1215_s9 = sphi %s1289_s9, %s1564_s9  }
   0x8   : > { %p1553_p1 = scmp.eq.s32.totalorder %s1308_s5, 0  ;;  %p916_p2 = scmp.ge.s32.totalorder %s1227_s12, 1 }
   0x9   : > { %p236_p3 = scmp.lt.s32.totalorder %s1227_s12, 3  ;;  %s1229_s14 = smov [#allocation7]  }
   0xa   : > { %p1316_p4 = por %p1553_p1, %p47_p0  ;;  %s251_s15 = sshll.u32 %s1229_s14, 4  ;;  %s252_s15 = int_to_ptr.vmem [resolvable:$true] %s251_s15 }
   0xb   : > { %p1320_p5 = pnand %p916_p2, %p236_p3  ;;  %s1230_s17 = smov [#allocation9]  }
   0xc   : > { %s1556_s6 = scalar_select %p1316_p4, 1, 0 }
   0xd   : > { %s1557_s13 = scalar_select %p1320_p5, 1, 0 }
   0xe   : > { %p1036_p6 = pneg %p1320_p5  ;;  %s267_s18 = sshll.u32 %s1230_s17, 4  ;;  %s1332_s18 = int_to_ptr.vmem [resolvable:$true] %s267_s18 }
   0xf   : > { %s1103_s21 = scalar_lea.hbm %s1546_s2, 1664 }
  0x10   : > { %p1328_p7 = pnand %p1036_p6, %p1553_p1  ;;  %p1104_p8 = scmp.ne.s32.totalorder %s1546_s2, %s1103_s21 }
  0x11   : > { %p1110_p12 = scmp.lt.u32.totalorder %s1103_s21, %s1546_s2 }
  0x12   : > { %p1105_p9 = pneg %p1328_p7 }
  0x14   : > { %p1106_p10 = pnand %p1105_p9, %p1104_p8 }
  0x16   : > { %p1107_p11 = pneg %p1106_p10 }
  0x18   : > { %p1112_p13 = pnand %p1110_p12, %p1107_p11 }
  0x1a   : > { %1115 = shalt.err (!%p1112_p13)
}
  0x1b   : > { %s1116_s26 = scalar_lea.vmem %s252_s15, 1664  ;;  %p1124_p6 = scmp.lt.s32.totalorder %s252_s15, %s252_s15 }
  0x1c   : > { %p1117_p0 = scmp.ne.s32.totalorder %s252_s15, %s1116_s26  ;;  %p1125_p1 = scmp.lt.s32.totalorder %s1116_s26, %s1116_s26 }
  0x1e   : > { %p1119_p2 = pnand %p1117_p0, %p1105_p9  ;;  %p1126_p4 = por %p1125_p1, %p1124_p6 }
  0x20   : > { %p1120_p3 = pneg %p1119_p2 }
  0x22   : > { %p1127_p5 = pnand %p1126_p4, %p1120_p3 }
  0x24   : > { %1130 = shalt.err (!%p1127_p5)
}
  0x25   : > { %s1231_s27 = smov 64   ;;  %s1232_s28 = smov 4  }
  0x26   : > { %1039 = dma.hbm_to_vmem [thread:$0]  (!%p1328_p7), %s1546_s2, 1664, %s252_s15, [#allocation8], %s1231_s27, %s1231_s27, %s1232_s28  }
  0x27   : > { %s1131_s17 = scalar_lea.hbm %s1548_s4, 128 }
  0x28   : > { %p1132_p8 = scmp.ne.s32.totalorder %s1548_s4, %s1131_s17  ;;  %p1138_p5 = scmp.lt.u32.totalorder %s1131_s17, %s1548_s4 }
  0x2a   : > { %p1134_p1 = pnand %p1132_p8, %p1105_p9 }
  0x2c   : > { %p1135_p4 = pneg %p1134_p1 }
  0x2e   : > { %p1140_p10 = pnand %p1138_p5, %p1135_p4 }
  0x30   : > { %1143 = shalt.err (!%p1140_p10)
}
  0x31   : > { %s1144_s15 = scalar_lea.vmem %s1332_s18, 128  ;;  %p1152_p0 = scmp.lt.s32.totalorder %s1332_s18, %s1332_s18 }
  0x32   : > { %p1145_p11 = scmp.ne.s32.totalorder %s1332_s18, %s1144_s15  ;;  %p1153_p2 = scmp.lt.s32.totalorder %s1144_s15, %s1144_s15 }
  0x34   : > { %p1147_p12 = pnand %p1145_p11, %p1105_p9  ;;  %p1154_p3 = por %p1153_p2, %p1152_p0 }
  0x36   : > { %p1148_p13 = pneg %p1147_p12 }
  0x38   : > { %p1155_p6 = pnand %p1154_p3, %p1148_p13 }
  0x3a   : > { %1158 = shalt.err (!%p1155_p6)
}
  0x3b   : > { %1042 = dma.hbm_to_vmem [thread:$0]  (!%p1328_p7), %s1548_s4, 128, %s1332_s18, [#allocation8], %s1231_s27, %s1231_s27, %s1232_s28  }
  0x3c   : > { %s1382_s25 = sadd.s32 1, %s1227_s12   ;;  %s34_s26 = sadd.s32 1, %s1223_s11 }
  0x3d   : > { %s31_s16 = ssub.s32 %s1227_s12, %s1382_s25  ;;  %p41_p9 = scmp.ne.s32.totalorder %s1223_s11, %s1219_s10 }
  0x3e   : > { %p32_p8 = scmp.eq.s32.totalorder %s31_s16, 0  ;;  %p42_p1 = scmp.eq.s32.totalorder %s1227_s12, 0 }
  0x3f   : > { %p1049_p4 = scmp.lt.s32.totalorder %s1227_s12, 2  ;;  %s287_s29 = sand.u32 1, %s1223_s11  }
  0x40   : > { %s1393_s30 = scalar_select %p32_p8, %s1223_s11, %s34_s26  }
  0x41   : > { %p43_p5 = por %p42_p1, %p41_p9  ;;  %s920_s9 = sshll.u32 %s287_s29, 4 }
  0x42   : > { %s943_s14 = sshll.u32 %s1227_s12, 8  ;;  %s291_s18 = scalar_lea.vmem [#allocation5], %s920_s9 }
  0x43   : > { %s1399_s20 = scalar_lea.hbm %s1544_s0, %s943_s14  ;;  %s298_s27 = sshll.u32 %s291_s18, 4  ;;  %s1405_s27 = int_to_ptr.vmem [resolvable:$true] %s298_s27 }
  0x44   : > { %p1401_p7 = pnand %p1049_p4, %p43_p5  ;;  %s1407_s12 = scalar_lea.sflag [#allocation6], %s287_s29 }
  0x45   : > { %s1159_s21 = scalar_lea.hbm %s1399_s20, 256  ;;  %s1164_s23 = scalar_lea.hbm %s1544_s0, 512 }
  0x46   : > { %p1160_p10 = scmp.ne.s32.totalorder %s1399_s20, %s1159_s21  ;;  %p1161_p11 = pneg %p1401_p7 }
  0x47   : > { %p1165_p0 = scmp.lt.u32.totalorder %s1399_s20, %s1544_s0  ;;  %p1166_p2 = scmp.lt.u32.totalorder %s1164_s23, %s1159_s21 }
  0x48   : > { %p1162_p12 = pnand %p1161_p11, %p1160_p10  ;;  %p1168_p6 = scmp.lt.u32.totalorder %s1159_s21, %s1399_s20 }
  0x49   : > { %p1167_p3 = por %p1166_p2, %p1165_p0 }
  0x4a   : > { %p1163_p13 = pneg %p1162_p12 }
  0x4b   : > { %p1169_p9 = por %p1168_p6, %p1167_p3 }
  0x4d   : > { %p1170_p8 = pnand %p1169_p9, %p1163_p13 }
  0x4f   : > { %1173 = shalt.err (!%p1170_p8)
}
  0x50   : > { %s1174_s16 = scalar_lea.vmem %s1405_s27, 256  ;;  %s1233_s29 = smov [#allocation5]  }
  0x51   : > { %p1175_p1 = scmp.ne.s32.totalorder %s1405_s27, %s1174_s16  ;;  %s1179_s9 = sshll.u32 %s1233_s29, 4  ;;  %s1180_s9 = int_to_ptr.vmem [resolvable:$false] %s1179_s9 }
  0x52   : > { %s1181_s14 = scalar_lea.vmem %s1180_s9, 512  ;;  %p1182_p10 = scmp.lt.s32.totalorder %s1405_s27, %s1180_s9 }
  0x53   : > { %p1177_p4 = pnand %p1175_p1, %p1161_p11  ;;  %p1183_p12 = scmp.lt.s32.totalorder %s1181_s14, %s1174_s16 }
  0x55   : > { %p1178_p5 = pneg %p1177_p4  ;;  %p1184_p0 = por %p1183_p12, %p1182_p10 }
  0x57   : > { %p1185_p2 = pnand %p1184_p0, %p1178_p5 }
  0x59   : > { %1188 = shalt.err (!%p1185_p2)
}
  0x5a   : > { %s1234_s17 = smov 128   ;;  %s1235_s19 = smov 8  }
  0x5b   : > { %1046 = dma.hbm_to_vmem [thread:$0]  (!%p1401_p7), %s1399_s20, 256, %s1405_s27, %s1407_s12, %s1234_s17, %s1234_s17, %s1235_s19  }
  0x5c   : > { %p1560_p11 = scmp.ne.s32.totalorder %s1557_s13, 0 }
  0x5d   : > { %s312_s18 = sand.u32 (!%p1560_p11), 1, %s1219_s10   ;;  %p1561_p13 = scmp.ne.s32.totalorder (!%p1560_p11), %s1556_s6, 0 }
  0x5e   : > { %310 = sbr.rel (%p1560_p11) target bundleno = 516 (0x204), region = 48  ;;  %s924_s21 = sshll.u32 (!%p1560_p11), %s312_s18, 4 }
  0x5f   : > { %s313_s22 = scalar_lea.sflag (!%p1560_p11), [#allocation6], %s312_s18  ;;  %s316_s15 = scalar_lea.vmem (!%p1560_p11), [#allocation5], %s924_s21 }
  0x65   : > { %1206 = dma.done.wait (%p1561_p13), %s313_s22, 256  }
  0x66   : > { %1208 = vsyncadd (%p1561_p13), %s313_s22, 4294967040  ;;  %p1562_p3 = scmp.eq.s32.totalorder %s1308_s5, 0 }
  0x68   : > { %1210 = dma.done.wait (%p1562_p3), [#allocation8], 1792   ;;  %p1563_p6 = pmov %p1562_p3 }
  0x69   : > { %v1446_v2 = vld [vmem:[%s316_s15] sm:$0xff]  ;;  %v1450_v3 = vld [vmem:[%s316_s15 + $0x8] sm:$0xff]  ;;  %v1236_v4 = vmov 0.0   ;;  %vm1237_vm0 = vmmov 0   ;;  %vm383_vm1 = vcmask 130048   ;;  %p362_p7 = scmp.lt.s32.totalorder %s1308_s5, 1 }
  0x6a   : > { %1212 = vsyncadd (%p1563_p6), [#allocation8], 4294965504  ;;  %653 = vadd.xlane.f32.xlu0 %v1446_v2  ;;  %648 = vmax.xlane.f32.xlu1 %v1446_v2  ;;  %v375_v5 = vpack.c.bf16 %v1450_v3, %v1446_v2  ;;  %v1094_v6 = vld [vmem:[%s1545_s1] sm:$0x7f]   ;;  %v947_v17 = vld [vmem:[#allocation7] sm:$0xff]   ;;  %v428_v39 = vmax.f32 %v1446_v2, %v1450_v3  ;;  %vm793_vm2 = vcmask 7168  }
  0x6b   : > { %1010 = vmatprep.subr.bf16.mxu1 %v1236_v4  ;;  %1004 = vmatprep.subr.bf16.mxu0 %v1236_v4  ;;  %v1092_v14 = vld [vmem:[#allocation9] sm:$0xff]   ;;  %v955_v19 = vld [vmem:[#allocation7 + $0x10] sm:$0xff]   ;;  %v948_v20 = vunpack.c.l.bf16 %v947_v17  ;;  %v949_v21 = vunpack.c.h.bf16 %v947_v17  ;;  %v959_v24 = vld [vmem:[#allocation7 + $0x18] sm:$0xff]   ;;  %s1569_s5 = smov (!%p362_p7, %s1308_s5), 1 }
  0x6c   : > { %1012 = vmatprep.mubr.msk.bf16.mxu1 %vm1237_vm0, %v1236_v4  ;;  %1006 = vmatprep.mubr.msk.bf16.mxu0 %vm1237_vm0, %v1236_v4  ;;  %v1093_v16 = vld [vmem:[%s1547_s3] sm:$0xff]   ;;  %v956_v25 = vunpack.c.l.bf16 %v955_v19  ;;  %v957_v26 = vunpack.c.h.bf16 %v955_v19  ;;  %v960_v27 = vunpack.c.l.bf16 %v959_v24  ;;  %v961_v28 = vunpack.c.h.bf16 %v959_v24  ;;  %v963_v29 = vld [vmem:[#allocation7 + $0x20] sm:$0xff]   ;;  %s944_s28 = sshll.u32 %s1569_s5, 4 }
  0x6d   : > { %1005 = vmatpush3.bf16.msra.mxu0 %v375_v5  ;;  %v951_v18 = vld [vmem:[#allocation7 + $0x8] sm:$0xff]   ;;  %v441_v30 = vadd.f32 %v948_v20, %v1446_v2  ;;  %v442_v31 = vadd.f32 %v949_v21, %v1450_v3  ;;  %v964_v42 = vunpack.c.l.bf16 %v963_v29  ;;  %v965_v45 = vunpack.c.h.bf16 %v963_v29  ;;  %v971_v55 = vld [vmem:[#allocation7 + $0x30] sm:$0xff]   ;;  %s366_s24 = scalar_lea.vmem %s1550_s7, %s944_s28  ;;  %s371_s29 = scalar_lea.vmem %s1551_s8, %s944_s28 }
  0x6e   : > { %655 = vadd.xlane.f32.xlu0 %v1450_v3  ;;  %650 = vmax.xlane.f32.xlu1 %v1450_v3  ;;  %v952_v22 = vunpack.c.l.bf16 %v951_v18  ;;  %v953_v23 = vunpack.c.h.bf16 %v951_v18  ;;  %v967_v34 = vld [vmem:[#allocation7 + $0x28] sm:$0xff]   ;;  %v473_v35 = vadd.f32 %v956_v25, %v1446_v2  ;;  %v474_v36 = vadd.f32 %v957_v26, %v1450_v3 }
  0x6f   : > { %v489_v37 = vadd.f32 %v960_v27, %v1446_v2  ;;  %v490_v38 = vadd.f32 %v961_v28, %v1450_v3  ;;  %v443_v40 = vmax.f32 %v441_v30, %v442_v31  ;;  %v968_v46 = vunpack.c.l.bf16 %v967_v34 }
  0x70   : > { %1007 = vmatmul.mubr.msk.bf16.vlgmr.msra.gmra.mrb[0].mxu0 %vm383_vm1, %v1094_v6  ;;  %v457_v32 = vadd.f32 %v952_v22, %v1446_v2  ;;  %v458_v33 = vadd.f32 %v953_v23, %v1450_v3  ;;  %v475_v43 = vmax.f32 %v473_v35, %v474_v36  ;;  %v429_v47 = vrot.slane %v428_v39, 4  ;;  %v975_v36 = vld [vmem:[#allocation7 + $0x38] sm:$0xff]  }
  0x71   : > { %v491_v44 = vmax.f32 %v489_v37, %v490_v38  ;;  %v444_v48 = vrot.slane %v443_v40, 4  ;;  %v505_v50 = vadd.f32 %v964_v42, %v1446_v2  ;;  %v506_v53 = vadd.f32 %v965_v45, %v1450_v3  ;;  %v979_v37 = vld [vmem:[#allocation7 + $0x40] sm:$0xff]  }
  0x72   : > { %v459_v41 = vmax.f32 %v457_v32, %v458_v33  ;;  %v476_v51 = vrot.slane %v475_v43, 4  ;;  %v969_v54 = vunpack.c.h.bf16 %v967_v34  ;;  %v430_v56 = vmax.f32 %v428_v39, %v429_v47 }
  0x73   : > { %v492_v52 = vrot.slane %v491_v44, 4  ;;  %v445_v57 = vmax.f32 %v443_v40, %v444_v48  ;;  %v521_v59 = vadd.f32 %v968_v46, %v1446_v2  ;;  %v507_v62 = vmax.f32 %v505_v50, %v506_v53 }
  0x74   : > { %v460_v49 = vrot.slane %v459_v41, 4  ;;  %v477_v60 = vmax.f32 %v475_v43, %v476_v51  ;;  %v522_v63 = vadd.f32 %v969_v54, %v1450_v3  ;;  %v431_v0 = vrot.slane %v430_v56, 2  ;;  %v983_v43 = vld [vmem:[#allocation7 + $0x48] sm:$0xff]  }
  0x75   : > { %v493_v61 = vmax.f32 %v491_v44, %v492_v52  ;;  %v446_v1 = vrot.slane %v445_v57, 2  ;;  %v972_v5 = vunpack.c.l.bf16 %v971_v55  ;;  %v977_v50 = vunpack.c.h.bf16 %v975_v36 }
  0x76   : > { %v461_v58 = vmax.f32 %v459_v41, %v460_v49  ;;  %v478_v6 = vrot.slane %v477_v60, 2  ;;  %v976_v49 = vunpack.c.l.bf16 %v975_v36  ;;  %v980_v51 = vunpack.c.l.bf16 %v979_v37 }
  0x77   : > { %v537_v22 = vadd.f32 %v972_v5, %v1446_v2  ;;  %v981_v54 = vunpack.c.h.bf16 %v979_v37 }
  0xf7   : > { %v654_v7 = vpop.xlane.xlu0 %653  ;;  %v649_v8 = vpop.xlane.xlu1 %648 }
  0xf8   : > { %v658_v10 = vmul.f32 0.0078125, %v654_v7  ;;  %v494_v7 = vrot.slane %v493_v61, 2 }
  0xfb   : > { %v656_v9 = vpop.xlane.xlu0 %655  ;;  %v651_v12 = vpop.xlane.xlu1 %650 }
  0xfc   : > { %v659_v11 = vmul.f32 0.0078125, %v656_v9  ;;  %v652_v15 = vpack.c.bf16 %v651_v12, %v649_v8  ;;  %v508_v8 = vrot.slane %v507_v62, 4  ;;  %v523_v9 = vmax.f32 %v521_v59, %v522_v63 }
  0xfd   : > { %v554_v59 = vadd.f32 %v977_v50, %v1450_v3  ;;  %v570_v63 = vadd.f32 %v981_v54, %v1450_v3 }
  0xfe   : > { %v660_v13 = vpack.c.bf16 %v659_v11, %v658_v10  ;;  %v432_v10 = vmax.f32 %v430_v56, %v431_v0  ;;  %v447_v11 = vmax.f32 %v445_v57, %v446_v1  ;;  %v524_v17 = vrot.slane %v523_v9, 4  ;;  %v987_v56 = vld [vmem:[#allocation7 + $0x50] sm:$0xff]   ;;  %v991_v1 = vld [vmem:[#allocation7 + $0x58] sm:$0xff]  }
  0xff   : > { %v985_v0 = vunpack.c.h.bf16 %v983_v43 }
 0x100   : > { %1011 = vmatpush3.bf16.msra.mxu1 %v660_v13  ;;  %v973_v13 = vunpack.c.h.bf16 %v971_v55  ;;  %v433_v19 = vrot.slane %v432_v10, 1  ;;  %v448_v20 = vrot.slane %v447_v11, 1  ;;  %v525_v26 = vmax.f32 %v523_v9, %v524_v17 }
 0x101   : > { %1016 = vmatprep.subr.bf16.mxu1 %v1236_v4  ;;  %v984_v55 = vunpack.c.l.bf16 %v983_v43 }
 0x102   : > { %v434_v28 = vmax.f32 %v432_v10, %v433_v19  ;;  %v449_v29 = vmax.f32 %v447_v11, %v448_v20  ;;  %v538_v31 = vadd.f32 %v973_v13, %v1450_v3  ;;  %v526_v42 = vrot.slane %v525_v26, 2 }
 0x103   : > { %1013 = vmatmul.mubr.msk.bf16.vlgmr.msra.gmra.mrb[0].mxu1 %vm383_vm1, %v1092_v14  ;;  %v479_v14 = vmax.f32 %v477_v60, %v478_v6  ;;  %v569_v60 = vadd.f32 %v980_v51, %v1446_v2  ;;  %v585_v6 = vadd.f32 %v984_v55, %v1446_v2  ;;  %v586_v10 = vadd.f32 %v985_v0, %v1450_v3 }
 0x104   : > { %1017 = vmatpush3.bf16.msra.mxu1 %v652_v15  ;;  %1018 = vmatprep.mubr.msk.bf16.mxu1 %vm1237_vm0, %v1236_v4  ;;  %v462_v4 = vrot.slane %v461_v58, 2  ;;  %v495_v15 = vmax.f32 %v493_v61, %v494_v7  ;;  %v539_v47 = vmax.f32 %v537_v22, %v538_v31  ;;  %v527_v48 = vmax.f32 %v525_v26, %v526_v42 }
 0x105   : > { %v480_v23 = vrot.slane %v479_v14, 1  ;;  %v988_v7 = vunpack.c.l.bf16 %v987_v56  ;;  %v571_v9 = vmax.f32 %v569_v60, %v570_v63  ;;  %v989_v11 = vunpack.c.h.bf16 %v987_v56 }
 0x106   : > { %v463_v12 = vmax.f32 %v461_v58, %v462_v4  ;;  %v496_v24 = vrot.slane %v495_v15, 1  ;;  %v540_v53 = vrot.slane %v539_v47, 4  ;;  %v528_v57 = vrot.slane %v527_v48, 1 }
 0x107   : > { %v481_v33 = vmax.f32 %v479_v14, %v480_v23  ;;  %v553_v58 = vadd.f32 %v976_v49, %v1446_v2  ;;  %v572_v19 = vrot.slane %v571_v9, 4  ;;  %v587_v20 = vmax.f32 %v585_v6, %v586_v10 }
 0x108   : > { %v464_v21 = vrot.slane %v463_v12, 1  ;;  %v497_v34 = vmax.f32 %v495_v15, %v496_v24  ;;  %v529_v4 = vmax.f32 %v527_v48, %v528_v57  ;;  %v601_v15 = vadd.f32 %v988_v7, %v1446_v2 }
 0x109   : > { %v555_v5 = vmax.f32 %v553_v58, %v554_v59  ;;  %v993_v23 = vunpack.c.h.bf16 %v991_v1 }
 0x10a   : > { %v465_v30 = vmax.f32 %v463_v12, %v464_v21  ;;  %v995_v12 = vld [vmem:[#allocation7 + $0x60] sm:$0xff]   ;;  %v602_v21 = vadd.f32 %v989_v11, %v1450_v3 }
 0x10b   : > { %v556_v14 = vrot.slane %v555_v5, 4  ;;  %v618_v31 = vadd.f32 %v993_v23, %v1450_v3 }
 0x10d   : > { %v557_v22 = vmax.f32 %v555_v5, %v556_v14 }
 0x10f   : > { %1019 = vmatmul.mubr.msk.bf16.vlgmr.msra.gmra.mrb[0].mxu1 %vm383_vm1, %v1093_v16  ;;  %v509_v16 = vmax.f32 %v507_v62, %v508_v8  ;;  %v541_v62 = vmax.f32 %v539_v47, %v540_v53 }
 0x111   : > { %v510_v25 = vrot.slane %v509_v16, 2  ;;  %v542_v8 = vrot.slane %v541_v62, 2 }
 0x113   : > { %v511_v35 = vmax.f32 %v509_v16, %v510_v25  ;;  %v992_v16 = vunpack.c.l.bf16 %v991_v1  ;;  %v543_v17 = vmax.f32 %v541_v62, %v542_v8  ;;  %v996_v25 = vunpack.c.l.bf16 %v995_v12 }
 0x115   : > { %v512_v46 = vrot.slane %v511_v35, 1  ;;  %v617_v24 = vadd.f32 %v992_v16, %v1446_v2  ;;  %v544_v26 = vrot.slane %v543_v17, 1 }
 0x117   : > { %v513_v52 = vmax.f32 %v511_v35, %v512_v46  ;;  %v545_v35 = vmax.f32 %v543_v17, %v544_v26 }
 0x143   : > { %v1482_v18 = vpop.f32.mrb[0].mxu0 }
 0x144   : > { %v1008_v27 = vpop.f32.mrb[1].mxu0  ;;  %v435_v39 = vadd.f32 %v434_v28, %v1482_v18  ;;  %v450_v40 = vadd.f32 %v449_v29, %v1482_v18  ;;  %v466_v41 = vadd.f32 %v465_v30, %v1482_v18  ;;  %v482_v44 = vadd.f32 %v481_v33, %v1482_v18 }
 0x145   : > { %v1486_v32 = vpop.f32.mrb[2].mxu0  ;;  %v498_v45 = vadd.f32 %v497_v34, %v1482_v18  ;;  %v514_v61 = vadd.f32 %v513_v52, %v1482_v18  ;;  %v530_v13 = vadd.f32 %v529_v4, %v1482_v18  ;;  %v573_v27 = vmax.f32 %v571_v9, %v572_v19 }
 0x146   : > { %v1009_v38 = vpop.f32.mrb[3].mxu0  ;;  %436 = vst [vmem:[#allocation2] sm:$0x1] %v435_v39  ;;  %451 = vst [vmem:[#allocation2] sm:$0x2] %v450_v40  ;;  %v588_v28 = vrot.slane %v587_v20, 4  ;;  %v603_v29 = vmax.f32 %v601_v15, %v602_v21  ;;  %v997_v33 = vunpack.c.h.bf16 %v995_v12  ;;  %v633_v34 = vadd.f32 %v996_v25, %v1446_v2 }
 0x147   : > { %467 = vst [vmem:[#allocation2] sm:$0x4] %v466_v41  ;;  %483 = vst [vmem:[#allocation2] sm:$0x8] %v482_v44  ;;  %v558_v30 = vrot.slane %v557_v22, 2  ;;  %v574_v36 = vrot.slane %v573_v27, 2  ;;  %v619_v40 = vmax.f32 %v617_v24, %v618_v31  ;;  %v546_v42 = vadd.f32 %v545_v35, %v1482_v18 }
 0x148   : > { %499 = vst [vmem:[#allocation2] sm:$0x10] %v498_v45  ;;  %515 = vst [vmem:[#allocation2] sm:$0x20] %v514_v61  ;;  %v589_v37 = vmax.f32 %v587_v20, %v588_v28  ;;  %v604_v38 = vrot.slane %v603_v29, 4  ;;  %v634_v41 = vadd.f32 %v997_v33, %v1450_v3 }
 0x149   : > { %531 = vst [vmem:[#allocation2] sm:$0x40] %v530_v13  ;;  %v559_v39 = vmax.f32 %v557_v22, %v558_v30  ;;  %v575_v43 = vmax.f32 %v573_v27, %v574_v36  ;;  %v620_v47 = vrot.slane %v619_v40, 4  ;;  %547 = vst [vmem:[#allocation2] sm:$0x80] %v546_v42 }
 0x14a   : > { %v590_v44 = vrot.slane %v589_v37, 2  ;;  %v605_v45 = vmax.f32 %v603_v29, %v604_v38  ;;  %v635_v2 = vmax.f32 %v633_v34, %v634_v41  ;;  %v937_v13 = vld [vmem:[#allocation3] ss:$0 sm:$0xff]  ;;  %v938_v15 = vld [vmem:[#allocation4] ss:$0 sm:$0xff] }
 0x14b   : > { %v560_v46 = vrot.slane %v559_v39, 1  ;;  %v576_v48 = vrot.slane %v575_v43, 1  ;;  %v621_v52 = vmax.f32 %v619_v40, %v620_v47 }
 0x14c   : > { %v591_v49 = vmax.f32 %v589_v37, %v590_v44  ;;  %v606_v50 = vrot.slane %v605_v45, 2  ;;  %v636_v3 = vrot.slane %v635_v2, 4 }
 0x14d   : > { %v561_v51 = vmax.f32 %v559_v39, %v560_v46  ;;  %v577_v53 = vmax.f32 %v575_v43, %v576_v48  ;;  %v622_v56 = vrot.slane %v621_v52, 2 }
 0x14e   : > { %v592_v54 = vrot.slane %v591_v49, 1  ;;  %v607_v55 = vmax.f32 %v605_v45, %v606_v50  ;;  %v637_v57 = vmax.f32 %v635_v2, %v636_v3 }
 0x14f   : > { %v562_v18 = vadd.f32 %v561_v51, %v1486_v32  ;;  %v578_v58 = vadd.f32 %v577_v53, %v1486_v32  ;;  %v623_v61 = vmax.f32 %v621_v52, %v622_v56 }
 0x150   : > { %v593_v59 = vmax.f32 %v591_v49, %v592_v54  ;;  %v608_v60 = vrot.slane %v607_v55, 1  ;;  %v638_v62 = vrot.slane %v637_v57, 2  ;;  %v644_v1 = vld [vmem:[#allocation2] sm:$0xff] }
 0x151   : > { %563 = vst [vmem:[#allocation2 + $0x8] sm:$0x1] %v562_v18  ;;  %579 = vst [vmem:[#allocation2 + $0x8] sm:$0x2] %v578_v58  ;;  %v624_v4 = vrot.slane %v623_v61, 1 }
 0x152   : > { %v594_v63 = vadd.f32 %v593_v59, %v1486_v32  ;;  %v609_v0 = vmax.f32 %v607_v55, %v608_v60  ;;  %v639_v5 = vmax.f32 %v637_v57, %v638_v62  ;;  %646 = vst [vmem:[%s366_s24] sm:$0xff] %v644_v1 }
 0x153   : > { %v625_v7 = vmax.f32 %v623_v61, %v624_v4 }
 0x154   : > { %595 = vst [vmem:[#allocation2 + $0x8] sm:$0x4] %v594_v63  ;;  %v610_v6 = vadd.f32 %v609_v0, %v1486_v32  ;;  %v640_v8 = vrot.slane %v639_v5, 1 }
 0x155   : > { %v626_v9 = vadd.f32 %v625_v7, %v1486_v32 }
 0x156   : > { %611 = vst [vmem:[#allocation2 + $0x8] sm:$0x8] %v610_v6  ;;  %v641_v10 = vmax.f32 %v639_v5, %v640_v8 }
 0x157   : > { %627 = vst [vmem:[#allocation2 + $0x8] sm:$0x10] %v626_v9 }
 0x158   : > { %v642_v11 = vadd.f32 %v641_v10, %v1486_v32 }
 0x15a   : > { %643 = vst [vmem:[#allocation2 + $0x8] sm:$0x20] %v642_v11 }
 0x161   : > { %v645_v12 = vld [vmem:[#allocation2 + $0x8] sm:$0x3f] }
 0x162   : > { %647 = vst [vmem:[%s366_s24 + $0x8] sm:$0x3f] %v645_v12 }
 0x1e2   : > { %v756_v14 = vpop.f32.mrb[0].mxu1 }
 0x1e3   : > { %v770_v16 = vmul.f32 %v937_v13, %v756_v14  ;;  %v1020_v17 = vpop.f32.mrb[1].mxu1 }
 0x1e4   : > { %v759_v19 = vpop.f32.mrb[2].mxu1 }
 0x1e5   : > { %v779_v20 = vadd.f32 %v938_v15, %v770_v16  ;;  %v771_v21 = vmul.f32 %v937_v13, %v759_v19  ;;  %v1021_v22 = vpop.f32.mrb[3].mxu1 }
 0x1e7   : > { %v939_v23 = vmul.f32 -1.442695, %v779_v20  ;;  %v780_v24 = vadd.f32 %v938_v15, %v771_v21 }
 0x1e9   : > { %1095 = vpow2.f32 %v939_v23  ;;  %v940_v25 = vmul.f32 -1.442695, %v780_v24 }
 0x1eb   : > { %1097 = vpow2.f32 %v940_v25 }
 0x1f3   : > { %v1096_v26 = vpop.eup %1095 }
 0x1f4   : > { %v787_v32 = vadd.f32 1.0, %v1096_v26 }
 0x1f5   : > { %v1098_v27 = vpop.eup %1097 }
 0x1f6   : > { %1099 = vrcp.f32 %v787_v32  ;;  %v788_v28 = vadd.f32 1.0, %v1098_v27 }
 0x1f8   : > { %1101 = vrcp.f32 %v788_v28 }
 0x200   : > { %v1100_v29 = vpop.eup %1099 }
 0x201   : > { %794 = vst.msk [vmem:[%s371_s29] sm:$0xff] %vm793_vm2, %v1100_v29 }
 0x202   : > { %v1102_v30 = vpop.eup %1101 }
 0x203   : > { %795 = vst.msk [vmem:[%s371_s29 + $0x8] sm:$0xff] %vm793_vm2, %v1102_v30 }
 0x204 PF: > { %p24_p9 = scmp.ge.s32.totalorder %s1382_s25, 4   ;;  %s1564_s9 = smov %s1219_s10 }
 0x205   : > { %s1565_s10 = smov %s1223_s11  ;;  %s1566_s11 = smov %s1393_s30 }
 0x206   : > { %s1567_s12 = smov %s1382_s25  ;;  %26 = sbr.rel (!%p24_p9) target bundleno = 7 (0x7), region = 120 }
 0x20d   :  { %833 = vsyncpa [#allocation6], 1 }
 0x20e   :  { %835 = vsyncpa [#allocation6 + $0x1], 1 }
 0x20f   :  { %836 = vsyncpa [#allocation8], 1 }

</bundles_post_ra>
